<compile_context>
chip_gen: v5e
topology: v5e:2x2
jax: 0.10.0
libtpu: 0.0.40
codegen_flags: <defaults>
</compile_context>

<pallas_src>
import jax
import jax.numpy as jnp
from jax.experimental import pallas as pl
from jax.experimental.pallas import tpu as pltpu

INPUT_DIM = 18
HIDDEN = 64
ACT_DIM = 5
GATE_PAD = 128          # each GRU gate block padded to a full 128-lane vreg
_LN_EPS = 1e-5          # PyTorch nn.LayerNorm default


def _round_up(x, m):
    return ((x + m - 1) // m) * m


def _norm(v):
    """LayerNorm without affine (gamma/beta folded into the following linear)."""
    mu = jnp.mean(v, axis=-1, keepdims=True)
    d = v - mu
    var = jnp.mean(d * d, axis=-1, keepdims=True)
    return d * jax.lax.rsqrt(var + _LN_EPS)


# ----------------------------------------------------------------------------------
# Fused sequence kernel: grid = (batch_tiles, T)
# ----------------------------------------------------------------------------------
def _fused_seq_kernel(obs_ref, h0_ref, w1_ref, w2_ref, wgru_ref, wq_ref, vec_ref,
                      out_ref, h_sc):
    f32 = jnp.float32
    t = pl.program_id(1)

    # At the first timestep of every batch tile, load the initial hidden state.
    @pl.when(t == 0)
    def _():
        h_sc[...] = h0_ref[...]

    x = obs_ref[0]                       # (bt, 18)
    h = h_sc[...]                        # (bt, 64)

    # 1) feature_norm (affine folded into w1 / b1)
    x = _norm(x)

    # 2) fc1: Linear(18->64) + ReLU + LayerNorm
    x = jnp.maximum(
        jnp.dot(x, w1_ref[...], preferred_element_type=f32) + vec_ref[0:1, 0:HIDDEN],
        0.0)
    x = _norm(x)

    # 3) fc2: Linear(64->64) + ReLU + LayerNorm
    x = jnp.maximum(
        jnp.dot(x, w2_ref[...], preferred_element_type=f32) + vec_ref[1:2, 0:HIDDEN],
        0.0)
    x = _norm(x)

    # 4) GRU cell, fused [x|h] @ W_gru, gates in 128-aligned blocks:
    #    block0: r pre-act, block1: z pre-act, block2: gi_n, block3: gh_n
    xh = jnp.concatenate([x, h], axis=-1)                      # (bt, 128)
    g = jnp.dot(xh, wgru_ref[...], preferred_element_type=f32) + vec_ref[3:4, :]
    H, GP = HIDDEN, GATE_PAD
    r = jax.nn.sigmoid(g[:, 0:H])
    z = jax.nn.sigmoid(g[:, GP:GP + H])
    n = jnp.tanh(g[:, 2 * GP:2 * GP + H] + r * g[:, 3 * GP:3 * GP + H])
    h_next = (1.0 - z) * n + z * h
    h_sc[...] = h_next

    # 5) output LayerNorm (affine folded into wq / bq) + 6) Q head (padded to 64 cols)
    out = _norm(h_next)
    logit = jnp.dot(out, wq_ref[...], preferred_element_type=f32) + vec_ref[2:3, 0:HIDDEN]

    # Lane-dense 128-wide output slab: [h_next (64) | logits padded to 64]
    out_ref[0] = jnp.concatenate([h_next, logit], axis=-1)


def _fused_call(obs, h0, packed):
    """obs: (T, B, 18) f32, h0: (B, 64) f32 -> slab (T, B, 128) f32."""
    obs = obs.astype(jnp.float32)
    h0 = h0.astype(jnp.float32)
    T, B, _ = obs.shape

    bt = min(_round_up(max(B, 1), 8), 256)          # batch tile (multiple of 8 sublanes)
    b_pad = _round_up(B, bt)
    nb = b_pad // bt
    if b_pad != B:
        obs = jnp.pad(obs, ((0, 0), (0, b_pad - B), (0, 0)))
        h0 = jnp.pad(h0, ((0, b_pad - B), (0, 0)))

    const = lambda b, t: (0, 0)
    out = pl.pallas_call(
        _fused_seq_kernel,
        out_shape=jax.ShapeDtypeStruct((T, b_pad, 2 * HIDDEN), jnp.float32),
        grid=(nb, T),
        in_specs=[
            pl.BlockSpec((1, bt, INPUT_DIM), lambda b, t: (t, b, 0)),      # obs
            pl.BlockSpec((bt, HIDDEN), lambda b, t: (b, 0)),               # h0
            pl.BlockSpec((INPUT_DIM, HIDDEN), const),                      # w1
            pl.BlockSpec((HIDDEN, HIDDEN), const),                         # w2
            pl.BlockSpec((2 * HIDDEN, 4 * GATE_PAD), const),               # w_gru
            pl.BlockSpec((HIDDEN, HIDDEN), const),                         # wq (padded)
            pl.BlockSpec((8, 4 * GATE_PAD), const),                        # vec slab
        ],
        out_specs=pl.BlockSpec((1, bt, 2 * HIDDEN), lambda b, t: (t, b, 0)),
        scratch_shapes=[pltpu.VMEM((bt, HIDDEN), jnp.float32)],
        compiler_params=pltpu.CompilerParams(
            dimension_semantics=("parallel", "arbitrary")),
    )(obs, h0, packed["w1"], packed["w2"], packed["w_gru"], packed["wq"], packed["vec"])
    return out[:, :B, :]


# ----------------------------------------------------------------------------------
# Parameters
# ----------------------------------------------------------------------------------
def init_params(key):
    """Deterministic synthetic parameters (shapes match the PyTorch module)."""
    ks = jax.random.split(key, 8)
    scale = 0.1

    def lin(k, din, dout):
        return scale * jax.random.normal(k, (din, dout), jnp.float32)

    return dict(
        ln0_g=jnp.ones((1, INPUT_DIM), jnp.float32),
        ln0_b=jnp.zeros((1, INPUT_DIM), jnp.float32),
        w1=lin(ks[0], INPUT_DIM, HIDDEN),
        b1=jnp.zeros((1, HIDDEN), jnp.float32),
        ln1_g=jnp.ones((1, HIDDEN), jnp.float32),
        ln1_b=jnp.zeros((1, HIDDEN), jnp.float32),
        w2=lin(ks[1], HIDDEN, HIDDEN),
        b2=jnp.zeros((1, HIDDEN), jnp.float32),
        ln2_g=jnp.ones((1, HIDDEN), jnp.float32),
        ln2_b=jnp.zeros((1, HIDDEN), jnp.float32),
        w_ih=lin(ks[2], HIDDEN, 3 * HIDDEN),                        # gates [r|z|n] on cols
        b_ih=scale * jax.random.normal(ks[3], (1, 3 * HIDDEN), jnp.float32),
        w_hh=lin(ks[4], HIDDEN, 3 * HIDDEN),
        b_hh=scale * jax.random.normal(ks[5], (1, 3 * HIDDEN), jnp.float32),
        ln3_g=jnp.ones((1, HIDDEN), jnp.float32),
        ln3_b=jnp.zeros((1, HIDDEN), jnp.float32),
        wq=0.01 * jax.random.normal(ks[6], (HIDDEN, ACT_DIM), jnp.float32),  # gain 0.01
        bq=jnp.zeros((1, ACT_DIM), jnp.float32),
    )


def pack_params(p):
    """Fold LayerNorm affines into the following linears and pack into 5 kernel refs."""
    f32 = jnp.float32
    H, GP = HIDDEN, GATE_PAD
    g0, bt0 = p["ln0_g"].reshape(-1), p["ln0_b"].reshape(-1)
    g1, bt1 = p["ln1_g"].reshape(-1), p["ln1_b"].reshape(-1)
    g2, bt2 = p["ln2_g"].reshape(-1), p["ln2_b"].reshape(-1)
    g3, bt3 = p["ln3_g"].reshape(-1), p["ln3_b"].reshape(-1)

    w1 = g0[:, None] * p["w1"]
    b1 = bt0 @ p["w1"] + p["b1"].reshape(-1)

    w2 = g1[:, None] * p["w2"]
    b2 = bt1 @ p["w2"] + p["b2"].reshape(-1)

    w_ih = g2[:, None] * p["w_ih"]
    b_ih = bt2 @ p["w_ih"] + p["b_ih"].reshape(-1)
    w_hh = p["w_hh"]
    b_hh = p["b_hh"].reshape(-1)

    # Fused GRU weight slab (2H x 4*GP): rows 0:H = x-side, rows H:2H = h-side.
    # Column blocks (each 128 wide, real in first 64 lanes): [r | z | gi_n | gh_n]
    w_gru = jnp.zeros((2 * H, 4 * GP), f32)
    w_gru = w_gru.at[:H, 0:H].set(w_ih[:, 0:H]).at[H:, 0:H].set(w_hh[:, 0:H])
    w_gru = (w_gru.at[:H, GP:GP + H].set(w_ih[:, H:2 * H])
                   .at[H:, GP:GP + H].set(w_hh[:, H:2 * H]))
    w_gru = w_gru.at[:H, 2 * GP:2 * GP + H].set(w_ih[:, 2 * H:])
    w_gru = w_gru.at[H:, 3 * GP:3 * GP + H].set(w_hh[:, 2 * H:])

    b_gru = jnp.zeros((4 * GP,), f32)
    b_gru = b_gru.at[0:H].set(b_ih[0:H] + b_hh[0:H])                 # r: biases pre-summed
    b_gru = b_gru.at[GP:GP + H].set(b_ih[H:2 * H] + b_hh[H:2 * H])   # z: biases pre-summed
    b_gru = b_gru.at[2 * GP:2 * GP + H].set(b_ih[2 * H:])            # gi_n bias
    b_gru = b_gru.at[3 * GP:3 * GP + H].set(b_hh[2 * H:])            # gh_n bias (scaled by r)

    wq = g3[:, None] * p["wq"]
    bq = bt3 @ p["wq"] + p["bq"].reshape(-1)
    wq_pad = jnp.zeros((H, H), f32).at[:, :ACT_DIM].set(wq)
    bq_pad = jnp.zeros((H,), f32).at[:ACT_DIM].set(bq)

    vec = jnp.zeros((8, 4 * GP), f32)
    vec = vec.at[0, :H].set(b1).at[1, :H].set(b2).at[2, :H].set(bq_pad).at[3, :].set(b_gru)

    return dict(w1=w1, w2=w2, w_gru=w_gru, wq=wq_pad, vec=vec)


# ----------------------------------------------------------------------------------
# Forward (mirrors ExpertQmix.forward)
# ----------------------------------------------------------------------------------
def expert_qmix_forward(inputs, packed, inference=False, saved_state_timesteps=None):
    obs = inputs["obs"]
    prev_state = inputs["prev_state"]

    obs3 = obs[None] if inference else obs
    assert obs3.ndim == 3, obs3.shape          # (T, B, input_dim)
    T, B = obs3.shape[0], obs3.shape[1]
    h0 = jnp.zeros((B, HIDDEN), jnp.float32) if prev_state is None else prev_state

    slab = _fused_call(obs3, h0, packed)       # (T, B, 128)
    hidden = slab[..., :HIDDEN]                # (T, B, 64)
    logit = slab[..., HIDDEN:HIDDEN + ACT_DIM]  # (T, B, 5)

    if inference:
        return {"logit": logit[0], "next_state": hidden[0]}
    res = {"logit": logit, "next_state": hidden[-1], "hidden_state": hidden}
    if saved_state_timesteps is not None:
        res["saved_state"] = [hidden[t - 1] for t in saved_state_timesteps]
    return res


# ----------------------------------------------------------------------------------
# Pure-JAX reference (mirrors the PyTorch math with unpacked params)
# ----------------------------------------------------------------------------------
def _ref_step(x, h, p):
    def ln(v, g, b):
        mu = v.mean(-1, keepdims=True)
        var = ((v - mu) ** 2).mean(-1, keepdims=True)
        return (v - mu) / jnp.sqrt(var + _LN_EPS) * g + b

    H = HIDDEN
    x = ln(x, p["ln0_g"], p["ln0_b"])
    x = ln(jnp.maximum(x @ p["w1"] + p["b1"], 0.0), p["ln1_g"], p["ln1_b"])
    x = ln(jnp.maximum(x @ p["w2"] + p["b2"], 0.0), p["ln2_g"], p["ln2_b"])
    gi = x @ p["w_ih"] + p["b_ih"]
    gh = h @ p["w_hh"] + p["b_hh"]
    r = jax.nn.sigmoid(gi[:, :H] + gh[:, :H])
    z = jax.nn.sigmoid(gi[:, H:2 * H] + gh[:, H:2 * H])
    n = jnp.tanh(gi[:, 2 * H:] + r * gh[:, 2 * H:])
    h_next = (1.0 - z) * n + z * h
    out = ln(h_next, p["ln3_g"], p["ln3_b"])
    return out @ p["wq"] + p["bq"], h_next


if __name__ == "__main__":
    key = jax.random.PRNGKey(0)
    k_param, k_obs, k_seq, k_h = jax.random.split(key, 4)
    raw = init_params(k_param)
    packed = pack_params(raw)

    B, T = 2, 8
    obs = jax.random.normal(k_obs, (B, INPUT_DIM), jnp.float32)
    prev_h = jax.random.normal(k_h, (B, HIDDEN), jnp.float32)

    # ---- inference path (single step) ----
    out = expert_qmix_forward({"obs": obs, "prev_state": prev_h}, packed, inference=True)
    jax.block_until_ready(out["logit"])
    jax.block_until_ready(out["next_state"])
    assert out["logit"].shape == (B, ACT_DIM)
    assert out["next_state"].shape == (B, HIDDEN)

    ref_logit, ref_h = _ref_step(obs, prev_h, raw)
    assert jnp.allclose(out["logit"], ref_logit, atol=1e-3, rtol=1e-3)
    assert jnp.allclose(out["next_state"], ref_h, atol=1e-3, rtol=1e-3)

    # ---- training / sequence path ----
    seq_obs = jax.random.normal(k_seq, (T, B, INPUT_DIM), jnp.float32)
    out_seq = expert_qmix_forward({"obs": seq_obs, "prev_state": None}, packed,
                                  inference=False)
    jax.block_until_ready(out_seq["logit"])
    assert out_seq["logit"].shape == (T, B, ACT_DIM)
    assert out_seq["hidden_state"].shape == (T, B, HIDDEN)

    h = jnp.zeros((B, HIDDEN), jnp.float32)
    ref_logits, ref_hids = [], []
    for t in range(T):
        lg, h = _ref_step(seq_obs[t], h, raw)
        ref_logits.append(lg)
        ref_hids.append(h)
    ref_logits = jnp.stack(ref_logits)
    ref_hids = jnp.stack(ref_hids)
    assert jnp.allclose(out_seq["logit"], ref_logits, atol=1e-3, rtol=1e-3)
    assert jnp.allclose(out_seq["hidden_state"], ref_hids, atol=1e-3, rtol=1e-3)

    print("KERNEL_OK")
</pallas_src>

<mosaic_0001>
module attributes {stable_mosaic.version = 11 : i64} {
  func.func @_fused_seq_kernel(%arg0: i32, %arg1: i32, %arg2: memref<1x8x18xf32, #tpu.memory_space<vmem>>, %arg3: memref<8x64xf32, #tpu.memory_space<vmem>>, %arg4: memref<18x64xf32, #tpu.memory_space<vmem>>, %arg5: memref<64x64xf32, #tpu.memory_space<vmem>>, %arg6: memref<128x512xf32, #tpu.memory_space<vmem>>, %arg7: memref<64x64xf32, #tpu.memory_space<vmem>>, %arg8: memref<8x512xf32, #tpu.memory_space<vmem>>, %arg9: memref<1x8x128xf32, #tpu.memory_space<vmem>>, %arg10: memref<8x64xf32, #tpu.memory_space<vmem>>) attributes {dimension_semantics = [#tpu.dimension_semantics<parallel>, #tpu.dimension_semantics<arbitrary>], iteration_bounds = array<i64: 1, 1>, scalar_prefetch = 0 : i64, scratch_operands = 1 : i64, tpu.core_type = #tpu.core_type<tc>, window_params = [{transform_indices = @transform_0, window_bounds = array<i64: 1, 8, 18>}, {transform_indices = @transform_1, window_bounds = array<i64: 8, 64>}, {pipeline_mode = #tpu.pipeline_mode<synchronous>, transform_indices = @transform_2, window_bounds = array<i64: 18, 64>}, {pipeline_mode = #tpu.pipeline_mode<synchronous>, transform_indices = @transform_3, window_bounds = array<i64: 64, 64>}, {pipeline_mode = #tpu.pipeline_mode<synchronous>, transform_indices = @transform_4, window_bounds = array<i64: 128, 512>}, {pipeline_mode = #tpu.pipeline_mode<synchronous>, transform_indices = @transform_5, window_bounds = array<i64: 64, 64>}, {pipeline_mode = #tpu.pipeline_mode<synchronous>, transform_indices = @transform_6, window_bounds = array<i64: 8, 512>}, {transform_indices = @transform_7, window_bounds = array<i64: 1, 8, 128>}]} {
    %c0_i32 = arith.constant 0 : i32
    %0 = arith.cmpi eq, %arg1, %c0_i32 : i32
    %1 = arith.extui %0 : i1 to i32
    %c0_i32_0 = arith.constant 0 : i32
    %2 = arith.cmpi ne, %1, %c0_i32_0 : i32
    scf.if %2 {
      %c0_51 = arith.constant 0 : index
      %c0_52 = arith.constant 0 : index
      %122 = vector.load %arg3[%c0_51, %c0_52] : memref<8x64xf32, #tpu.memory_space<vmem>>, vector<8x64xf32>
      %c0_53 = arith.constant 0 : index
      %c0_54 = arith.constant 0 : index
      %123 = vector.load %arg10[%c0_53, %c0_54] : memref<8x64xf32, #tpu.memory_space<vmem>>, vector<8x64xf32>
      tpu.vector_store %arg10[%c0_53, %c0_54], %122 {strides = array<i32>} : memref<8x64xf32, #tpu.memory_space<vmem>>, vector<8x64xf32>,
    } else {
    }
    %c0 = arith.constant 0 : index
    %c0_1 = arith.constant 0 : index
    %c0_2 = arith.constant 0 : index
    %3 = vector.load %arg2[%c0, %c0_1, %c0_2] : memref<1x8x18xf32, #tpu.memory_space<vmem>>, vector<1x8x18xf32>
    %4 = vector.shape_cast %3 : vector<1x8x18xf32> to vector<8x18xf32>
    %c0_3 = arith.constant 0 : index
    %c0_4 = arith.constant 0 : index
    %5 = vector.load %arg10[%c0_3, %c0_4] : memref<8x64xf32, #tpu.memory_space<vmem>>, vector<8x64xf32>
    %cst = arith.constant dense<0.000000e+00> : vector<8xf32>
    %6 = vector.multi_reduction <add>, %4, %cst [1] : vector<8x18xf32> to vector<8xf32>
    %7 = vector.shape_cast %6 : vector<8xf32> to vector<8x1xf32>
    %cst_5 = arith.constant 1.800000e+01 : f32
    %8 = vector.broadcast %cst_5 : f32 to vector<8x1xf32>
    %9 = arith.divf %7, %8 : vector<8x1xf32>
    %10 = vector.broadcast %9 : vector<8x1xf32> to vector<8x18xf32>
    %11 = arith.subf %4, %10 : vector<8x18xf32>
    %12 = arith.mulf %11, %11 : vector<8x18xf32>
    %cst_6 = arith.constant dense<0.000000e+00> : vector<8xf32>
    %13 = vector.multi_reduction <add>, %12, %cst_6 [1] : vector<8x18xf32> to vector<8xf32>
    %14 = vector.shape_cast %13 : vector<8xf32> to vector<8x1xf32>
    %cst_7 = arith.constant 1.800000e+01 : f32
    %15 = vector.broadcast %cst_7 : f32 to vector<8x1xf32>
    %16 = arith.divf %14, %15 : vector<8x1xf32>
    %cst_8 = arith.constant 9.99999974E-6 : f32
    %17 = vector.broadcast %cst_8 : f32 to vector<8x1xf32>
    %18 = arith.addf %16, %17 : vector<8x1xf32>
    %19 = math.rsqrt %18 : vector<8x1xf32>
    %20 = vector.broadcast %19 : vector<8x1xf32> to vector<8x18xf32>
    %21 = arith.mulf %11, %20 : vector<8x18xf32>
    %c0_9 = arith.constant 0 : index
    %c0_10 = arith.constant 0 : index
    %22 = vector.load %arg4[%c0_9, %c0_10] : memref<18x64xf32, #tpu.memory_space<vmem>>, vector<18x64xf32>
    %cst_11 = arith.constant dense<0.000000e+00> : vector<8x64xf32>
    %23 = tpu.matmul %21, %22, %cst_11 {dimension_numbers = #tpu.dot_dimension_numbers<[1], [0], [0], [1], [0, 0, 1, 1], [], []>} : vector<8x18xf32>, vector<18x64xf32>, vector<8x64xf32> -> vector<8x64xf32>
    %c0_12 = arith.constant 0 : index
    %c0_13 = arith.constant 0 : index
    %24 = vector.load %arg8[%c0_12, %c0_13] : memref<8x512xf32, #tpu.memory_space<vmem>>, vector<1x64xf32>
    %25 = vector.broadcast %24 : vector<1x64xf32> to vector<8x64xf32>
    %26 = arith.addf %23, %25 : vector<8x64xf32>
    %cst_14 = arith.constant 0.000000e+00 : f32
    %27 = vector.broadcast %cst_14 : f32 to vector<8x64xf32>
    %28 = arith.maximumf %26, %27 : vector<8x64xf32>
    %cst_15 = arith.constant dense<0.000000e+00> : vector<8xf32>
    %29 = vector.multi_reduction <add>, %28, %cst_15 [1] : vector<8x64xf32> to vector<8xf32>
    %30 = vector.shape_cast %29 : vector<8xf32> to vector<8x1xf32>
    %cst_16 = arith.constant 6.400000e+01 : f32
    %31 = vector.broadcast %cst_16 : f32 to vector<8x1xf32>
    %32 = arith.divf %30, %31 : vector<8x1xf32>
    %33 = vector.broadcast %32 : vector<8x1xf32> to vector<8x64xf32>
    %34 = arith.subf %28, %33 : vector<8x64xf32>
    %35 = arith.mulf %34, %34 : vector<8x64xf32>
    %cst_17 = arith.constant dense<0.000000e+00> : vector<8xf32>
    %36 = vector.multi_reduction <add>, %35, %cst_17 [1] : vector<8x64xf32> to vector<8xf32>
    %37 = vector.shape_cast %36 : vector<8xf32> to vector<8x1xf32>
    %cst_18 = arith.constant 6.400000e+01 : f32
    %38 = vector.broadcast %cst_18 : f32 to vector<8x1xf32>
    %39 = arith.divf %37, %38 : vector<8x1xf32>
    %cst_19 = arith.constant 9.99999974E-6 : f32
    %40 = vector.broadcast %cst_19 : f32 to vector<8x1xf32>
    %41 = arith.addf %39, %40 : vector<8x1xf32>
    %42 = math.rsqrt %41 : vector<8x1xf32>
    %43 = vector.broadcast %42 : vector<8x1xf32> to vector<8x64xf32>
    %44 = arith.mulf %34, %43 : vector<8x64xf32>
    %c0_20 = arith.constant 0 : index
    %c0_21 = arith.constant 0 : index
    %45 = vector.load %arg5[%c0_20, %c0_21] : memref<64x64xf32, #tpu.memory_space<vmem>>, vector<64x64xf32>
    %cst_22 = arith.constant dense<0.000000e+00> : vector<8x64xf32>
    %46 = tpu.matmul %44, %45, %cst_22 {dimension_numbers = #tpu.dot_dimension_numbers<[1], [0], [0], [1], [0, 0, 1, 1], [], []>} : vector<8x64xf32>, vector<64x64xf32>, vector<8x64xf32> -> vector<8x64xf32>
    %c1 = arith.constant 1 : index
    %c0_23 = arith.constant 0 : index
    %47 = vector.load %arg8[%c1, %c0_23] : memref<8x512xf32, #tpu.memory_space<vmem>>, vector<1x64xf32>
    %48 = vector.broadcast %47 : vector<1x64xf32> to vector<8x64xf32>
    %49 = arith.addf %46, %48 : vector<8x64xf32>
    %cst_24 = arith.constant 0.000000e+00 : f32
    %50 = vector.broadcast %cst_24 : f32 to vector<8x64xf32>
    %51 = arith.maximumf %49, %50 : vector<8x64xf32>
    %cst_25 = arith.constant dense<0.000000e+00> : vector<8xf32>
    %52 = vector.multi_reduction <add>, %51, %cst_25 [1] : vector<8x64xf32> to vector<8xf32>
    %53 = vector.shape_cast %52 : vector<8xf32> to vector<8x1xf32>
    %cst_26 = arith.constant 6.400000e+01 : f32
    %54 = vector.broadcast %cst_26 : f32 to vector<8x1xf32>
    %55 = arith.divf %53, %54 : vector<8x1xf32>
    %56 = vector.broadcast %55 : vector<8x1xf32> to vector<8x64xf32>
    %57 = arith.subf %51, %56 : vector<8x64xf32>
    %58 = arith.mulf %57, %57 : vector<8x64xf32>
    %cst_27 = arith.constant dense<0.000000e+00> : vector<8xf32>
    %59 = vector.multi_reduction <add>, %58, %cst_27 [1] : vector<8x64xf32> to vector<8xf32>
    %60 = vector.shape_cast %59 : vector<8xf32> to vector<8x1xf32>
    %cst_28 = arith.constant 6.400000e+01 : f32
    %61 = vector.broadcast %cst_28 : f32 to vector<8x1xf32>
    %62 = arith.divf %60, %61 : vector<8x1xf32>
    %cst_29 = arith.constant 9.99999974E-6 : f32
    %63 = vector.broadcast %cst_29 : f32 to vector<8x1xf32>
    %64 = arith.addf %62, %63 : vector<8x1xf32>
    %65 = math.rsqrt %64 : vector<8x1xf32>
    %66 = vector.broadcast %65 : vector<8x1xf32> to vector<8x64xf32>
    %67 = arith.mulf %57, %66 : vector<8x64xf32>
    %68 = tpu.concatenate %67, %5 in 1 : vector<8x64xf32>, vector<8x64xf32> -> vector<8x128xf32>
    %c0_30 = arith.constant 0 : index
    %c0_31 = arith.constant 0 : index
    %69 = vector.load %arg6[%c0_30, %c0_31] : memref<128x512xf32, #tpu.memory_space<vmem>>, vector<128x512xf32>
    %cst_32 = arith.constant dense<0.000000e+00> : vector<8x512xf32>
    %70 = tpu.matmul %68, %69, %cst_32 {dimension_numbers = #tpu.dot_dimension_numbers<[1], [0], [0], [1], [0, 0, 1, 1], [], []>} : vector<8x128xf32>, vector<128x512xf32>, vector<8x512xf32> -> vector<8x512xf32>
    %c3 = arith.constant 3 : index
    %c0_33 = arith.constant 0 : index
    %71 = vector.load %arg8[%c3, %c0_33] : memref<8x512xf32, #tpu.memory_space<vmem>>, vector<1x512xf32>
    %72 = vector.broadcast %71 : vector<1x512xf32> to vector<8x512xf32>
    %73 = arith.addf %70, %72 : vector<8x512xf32>
    %74 = vector.extract_strided_slice %73 {offsets = [0, 0], sizes = [8, 64], strides = [1, 1]} : vector<8x512xf32> to vector<8x64xf32>
    %75 = arith.negf %74 : vector<8x64xf32>
    %76 = math.exp %75 : vector<8x64xf32>
    %cst_34 = arith.constant 1.000000e+00 : f32
    %77 = vector.broadcast %cst_34 : f32 to vector<8x64xf32>
    %78 = arith.addf %77, %76 : vector<8x64xf32>
    %79 = arith.divf %77, %78 : vector<8x64xf32>
    %80 = vector.extract_strided_slice %73 {offsets = [0, 128], sizes = [8, 64], strides = [1, 1]} : vector<8x512xf32> to vector<8x64xf32>
    %81 = arith.negf %80 : vector<8x64xf32>
    %82 = math.exp %81 : vector<8x64xf32>
    %cst_35 = arith.constant 1.000000e+00 : f32
    %83 = vector.broadcast %cst_35 : f32 to vector<8x64xf32>
    %84 = arith.addf %83, %82 : vector<8x64xf32>
    %85 = arith.divf %83, %84 : vector<8x64xf32>
    %86 = vector.extract_strided_slice %73 {offsets = [0, 256], sizes = [8, 64], strides = [1, 1]} : vector<8x512xf32> to vector<8x64xf32>
    %87 = vector.extract_strided_slice %73 {offsets = [0, 384], sizes = [8, 64], strides = [1, 1]} : vector<8x512xf32> to vector<8x64xf32>
    %88 = arith.mulf %79, %87 : vector<8x64xf32>
    %89 = arith.addf %86, %88 : vector<8x64xf32>
    %90 = math.tanh %89 : vector<8x64xf32>
    %cst_36 = arith.constant 1.000000e+00 : f32
    %91 = vector.broadcast %cst_36 : f32 to vector<8x64xf32>
    %92 = arith.subf %91, %85 : vector<8x64xf32>
    %93 = arith.mulf %92, %90 : vector<8x64xf32>
    %94 = arith.mulf %85, %5 : vector<8x64xf32>
    %95 = arith.addf %93, %94 : vector<8x64xf32>
    %c0_37 = arith.constant 0 : index
    %c0_38 = arith.constant 0 : index
    %96 = vector.load %arg10[%c0_37, %c0_38] : memref<8x64xf32, #tpu.memory_space<vmem>>, vector<8x64xf32>
    tpu.vector_store %arg10[%c0_37, %c0_38], %95 {strides = array<i32>} : memref<8x64xf32, #tpu.memory_space<vmem>>, vector<8x64xf32>,
    %cst_39 = arith.constant dense<0.000000e+00> : vector<8xf32>
    %97 = vector.multi_reduction <add>, %95, %cst_39 [1] : vector<8x64xf32> to vector<8xf32>
    %98 = vector.shape_cast %97 : vector<8xf32> to vector<8x1xf32>
    %cst_40 = arith.constant 6.400000e+01 : f32
    %99 = vector.broadcast %cst_40 : f32 to vector<8x1xf32>
    %100 = arith.divf %98, %99 : vector<8x1xf32>
    %101 = vector.broadcast %100 : vector<8x1xf32> to vector<8x64xf32>
    %102 = arith.subf %95, %101 : vector<8x64xf32>
    %103 = arith.mulf %102, %102 : vector<8x64xf32>
    %cst_41 = arith.constant dense<0.000000e+00> : vector<8xf32>
    %104 = vector.multi_reduction <add>, %103, %cst_41 [1] : vector<8x64xf32> to vector<8xf32>
    %105 = vector.shape_cast %104 : vector<8xf32> to vector<8x1xf32>
    %cst_42 = arith.constant 6.400000e+01 : f32
    %106 = vector.broadcast %cst_42 : f32 to vector<8x1xf32>
    %107 = arith.divf %105, %106 : vector<8x1xf32>
    %cst_43 = arith.constant 9.99999974E-6 : f32
    %108 = vector.broadcast %cst_43 : f32 to vector<8x1xf32>
    %109 = arith.addf %107, %108 : vector<8x1xf32>
    %110 = math.rsqrt %109 : vector<8x1xf32>
    %111 = vector.broadcast %110 : vector<8x1xf32> to vector<8x64xf32>
    %112 = arith.mulf %102, %111 : vector<8x64xf32>
    %c0_44 = arith.constant 0 : index
    %c0_45 = arith.constant 0 : index
    %113 = vector.load %arg7[%c0_44, %c0_45] : memref<64x64xf32, #tpu.memory_space<vmem>>, vector<64x64xf32>
    %cst_46 = arith.constant dense<0.000000e+00> : vector<8x64xf32>
    %114 = tpu.matmul %112, %113, %cst_46 {dimension_numbers = #tpu.dot_dimension_numbers<[1], [0], [0], [1], [0, 0, 1, 1], [], []>} : vector<8x64xf32>, vector<64x64xf32>, vector<8x64xf32> -> vector<8x64xf32>
    %c2 = arith.constant 2 : index
    %c0_47 = arith.constant 0 : index
    %115 = vector.load %arg8[%c2, %c0_47] : memref<8x512xf32, #tpu.memory_space<vmem>>, vector<1x64xf32>
    %116 = vector.broadcast %115 : vector<1x64xf32> to vector<8x64xf32>
    %117 = arith.addf %114, %116 : vector<8x64xf32>
    %118 = tpu.concatenate %95, %117 in 1 : vector<8x64xf32>, vector<8x64xf32> -> vector<8x128xf32>
    %c0_48 = arith.constant 0 : index
    %c0_49 = arith.constant 0 : index
    %c0_50 = arith.constant 0 : index
    %119 = vector.load %arg9[%c0_48, %c0_49, %c0_50] : memref<1x8x128xf32, #tpu.memory_space<vmem>>, vector<1x8x128xf32>
    %120 = vector.shape_cast %119 : vector<1x8x128xf32> to vector<8x128xf32>
    %121 = vector.shape_cast %118 : vector<8x128xf32> to vector<1x8x128xf32>
    tpu.vector_store %arg9[%c0_48, %c0_49, %c0_50], %121 {strides = array<i32>} : memref<1x8x128xf32, #tpu.memory_space<vmem>>, vector<1x8x128xf32>,
    return
  }
  func.func @transform_0(%arg0: i32, %arg1: i32) -> (i32, i32, i32) {
    %c0_i32 = arith.constant 0 : i32
    %c0_i32_0 = arith.constant 0 : i32
    return %arg1, %arg0, %c0_i32 : i32, i32, i32
  }
  func.func @transform_1(%arg0: i32, %arg1: i32) -> (i32, i32) {
    %c0_i32 = arith.constant 0 : i32
    %c0_i32_0 = arith.constant 0 : i32
    return %arg0, %c0_i32 : i32, i32
  }
  func.func @transform_2(%arg0: i32, %arg1: i32) -> (i32, i32) {
    %c0_i32 = arith.constant 0 : i32
    %c0_i32_0 = arith.constant 0 : i32
    %c0_i32_1 = arith.constant 0 : i32
    return %c0_i32, %c0_i32_0 : i32, i32
  }
  func.func @transform_3(%arg0: i32, %arg1: i32) -> (i32, i32) {
    %c0_i32 = arith.constant 0 : i32
    %c0_i32_0 = arith.constant 0 : i32
    %c0_i32_1 = arith.constant 0 : i32
    return %c0_i32, %c0_i32_0 : i32, i32
  }
  func.func @transform_4(%arg0: i32, %arg1: i32) -> (i32, i32) {
    %c0_i32 = arith.constant 0 : i32
    %c0_i32_0 = arith.constant 0 : i32
    %c0_i32_1 = arith.constant 0 : i32
    return %c0_i32, %c0_i32_0 : i32, i32
  }
  func.func @transform_5(%arg0: i32, %arg1: i32) -> (i32, i32) {
    %c0_i32 = arith.constant 0 : i32
    %c0_i32_0 = arith.constant 0 : i32
    %c0_i32_1 = arith.constant 0 : i32
    return %c0_i32, %c0_i32_0 : i32, i32
  }
  func.func @transform_6(%arg0: i32, %arg1: i32) -> (i32, i32) {
    %c0_i32 = arith.constant 0 : i32
    %c0_i32_0 = arith.constant 0 : i32
    %c0_i32_1 = arith.constant 0 : i32
    return %c0_i32, %c0_i32_0 : i32, i32
  }
  func.func @transform_7(%arg0: i32, %arg1: i32) -> (i32, i32, i32) {
    %c0_i32 = arith.constant 0 : i32
    %c0_i32_0 = arith.constant 0 : i32
    return %arg1, %arg0, %c0_i32 : i32, i32, i32
  }
}

</mosaic_0001>

<bundles_post_ra>
// kernel: tpu_custom_call.1
= control target key start
LH: loop header
LB: loop body
LE: loop exit
PB: predicated region body
PF: predicated region fallthrough
CT: control target
= control target key end

     0   :  { %12 = vsyncpa [#allocation4], 0  ;;  %s930_s0 = inlined_call_operand.hbm [shape: f32[1,8,18], index: 0, kind: input, shape index: {}]   ;;  %s931_s1 = inlined_call_operand.hbm [shape: f32[8,64], index: 1, kind: input, shape index: {}]   ;;  %s932_s2 = inlined_call_operand.hbm [shape: f32[18,64], index: 2, kind: input, shape index: {}]   ;;  %s933_s3 = inlined_call_operand.hbm [shape: f32[64,64], index: 3, kind: input, shape index: {}]   ;;  %s934_s4 = inlined_call_operand.hbm [shape: f32[128,512], index: 4, kind: input, shape index: {}]   ;;  %s935_s5 = inlined_call_operand.hbm [shape: f32[64,64], index: 5, kind: input, shape index: {}]   ;;  %s936_s6 = inlined_call_operand.hbm [shape: f32[8,512], index: 6, kind: input, shape index: {}]   ;;  %s937_s7 = inlined_call_operand.hbm [shape: f32[1,8,128], index: 7, kind: output, shape index: {}]  }
   0x1   :  { %13 = vsyncpa [#allocation7], 0 }
   0x2   :  { %14 = vsyncpa [#allocation10], 0 }
   0x3   :  { %15 = vsyncpa [#allocation13], 0  ;;  %s33_s26 = sshll.u32 %s931_s1, 4  ;;  %s34_s26 = int_to_ptr.hbm [resolvable:$true] %s33_s26 }
   0x4   :  { %16 = vsyncpa [#allocation5], 0  ;;  %s817_s27 = smov [#allocation6]   ;;  %s56_s8 = sshll.u32 %s933_s3, 4  ;;  %s57_s8 = int_to_ptr.hbm [resolvable:$true] %s56_s8 }
   0x5   :  { %s35_s28 = sshll.u32 %s817_s27, 4  ;;  %s818_s9 = smov [#allocation9]   ;;  %s36_s28 = int_to_ptr.vmem [resolvable:$true] %s35_s28 }
   0x6   :  { %38 = dma.hbm_to_vmem [thread:$0]  %s34_s26, 128, %s36_s28, [#allocation7]  }
   0x7   :  { %s58_s10 = sshll.u32 %s818_s9, 4  ;;  %s82_s13 = sshll.u32 %s935_s5, 4  ;;  %s59_s10 = int_to_ptr.vmem [resolvable:$true] %s58_s10  ;;  %s83_s13 = int_to_ptr.hbm [resolvable:$true] %s82_s13 }
   0x8   :  { %s819_s1 = smov 128   ;;  %s820_s14 = smov 8  }
   0x9   :  { %64 = dma.hbm_to_vmem [thread:$0]  %s57_s8, 1024, %s59_s10, [#allocation10], %s819_s1, %s819_s1, %s820_s14  }
   0xa   :  { %s22_s17 = sshll.u32 %s930_s0, 4  ;;  %s821_s18 = smov [#allocation12]   ;;  %s23_s17 = int_to_ptr.hbm [resolvable:$true] %s22_s17 }
   0xb   :  { %s84_s19 = sshll.u32 %s821_s18, 4  ;;  %s822_s3 = smov [#allocation3]   ;;  %s85_s19 = int_to_ptr.vmem [resolvable:$true] %s84_s19 }
   0xc   :  { %90 = dma.hbm_to_vmem [thread:$0]  %s83_s13, 1024, %s85_s19, [#allocation13], %s819_s1, %s819_s1, %s820_s14  }
   0xd   :  { %s24_s20 = sshll.u32 %s822_s3, 4  ;;  %s43_s5 = sshll.u32 %s932_s2, 4  ;;  %s25_s20 = int_to_ptr.vmem [resolvable:$true] %s24_s20  ;;  %s44_s5 = int_to_ptr.hbm [resolvable:$true] %s43_s5 }
   0xe   :  { %27 = dma.hbm_to_vmem [thread:$0]  %s23_s17, 128, %s25_s20, [#allocation4]  }
   0xf   :  { %s69_s25 = sshll.u32 %s934_s4, 4  ;;  %s823_s26 = smov [#allocation8]   ;;  %s70_s25 = int_to_ptr.hbm [resolvable:$true] %s69_s25 }
  0x10   :  { %s45_s0 = sshll.u32 %s823_s26, 4  ;;  %s824_s27 = smov [#allocation11]   ;;  %s46_s0 = int_to_ptr.vmem [resolvable:$true] %s45_s0 }
  0x11   :  { %51 = dma.hbm_to_vmem [thread:$0]  %s44_s5, 384, %s46_s0, [#allocation7], %s819_s1, %s819_s1, %s820_s14  }
  0x12   :  { %s71_s28 = sshll.u32 %s824_s27, 4  ;;  %s825_s29 = smov 512   ;;  %s72_s28 = int_to_ptr.vmem [resolvable:$true] %s71_s28 }
  0x13   :  { %s826_s30 = smov 32   ;;  %s96_s9 = sshll.u32 %s936_s6, 4  ;;  %s97_s9 = int_to_ptr.hbm [resolvable:$true] %s96_s9 }
  0x14   :  { %77 = dma.hbm_to_vmem [thread:$0]  %s70_s25, 8192, %s72_s28, [#allocation10], %s825_s29, %s825_s29, %s826_s30  }
  0x15   :  { %s827_s10 = smov [#allocation14]  }
  0x16   :  { %s98_s11 = sshll.u32 %s827_s10, 4  ;;  %s99_s11 = int_to_ptr.vmem [resolvable:$true] %s98_s11 }
  0x17   :  { %101 = dma.hbm_to_vmem [thread:$0]  %s97_s9, 512, %s99_s11, [#allocation13]  }
  0x18   :  { %807 = dma.done.wait [#allocation4], 128  }
  0x19   :  { %808 = vsyncadd [#allocation4], 4294967168 }
  0x1a   :  { %809 = dma.done.wait [#allocation7], 512  }
  0x1b   :  { %810 = vsyncadd [#allocation7], 4294966784 }
  0x1c   :  { %811 = dma.done.wait [#allocation10], 9216  }
  0x1d   :  { %812 = vsyncadd [#allocation10], 4294958080 }
  0x1e   :  { %813 = dma.done.wait [#allocation13], 1536  }
  0x1f   :  { %814 = vsyncadd [#allocation13], 4294965760  ;;  %vm139_vm0 = vcmask 146432   ;;  %v137_v0 = vld [vmem:[#allocation3] sm:$0xff]  ;;  %v828_v2 = vmov 18.0   ;;  %vm176_vm2 = vcmask 1041408  }
  0x20   :  { %v140_v1 = vsel %vm139_vm0, %v137_v0, 0.0  ;;  %593 = vrcp.f32 %v828_v2  ;;  %v171_v14 = vld [vmem:[#allocation8 + $0x10] sm:$0x3]  ;;  %v170_v15 = vld [vmem:[#allocation8 + $0x8] sm:$0xff]  ;;  %v169_v16 = vld [vmem:[#allocation8] sm:$0xff]  ;;  %vm135_vm6 = vcmask 523264  }
  0x21   :  { %141 = vadd.xlane.f32.xlu0 %v140_v1  ;;  %572 = vmatpush.msk.msra.mxu0 %vm176_vm2, %v171_v14  ;;  %v172_v28 = vld [vmem:[#allocation14] ss:$0 sm:$0xff]  ;;  %v829_v33 = vmov 64.0   ;;  %v238_v45 = vld [vmem:[#allocation9 + $0x38] sm:$0xff]  ;;  %v237_v46 = vld [vmem:[#allocation9 + $0x30] sm:$0xff]  ;;  %s830_s4 = smov 64  }
  0x22   :  { %251 = vmatpush.msra.mxu1 %v238_v45  ;;  %v236_v47 = vld [vmem:[#allocation9 + $0x28] sm:$0xff]  ;;  %v235_v48 = vld [vmem:[#allocation9 + $0x20] sm:$0xff]  ;;  %v234_v49 = vld [vmem:[#allocation9 + $0x18] sm:$0xff]  ;;  %s831_s6 = smov [#allocation15]   ;;  %s559_s14 = sshll.u32 %s937_s7, 4  ;;  %s560_s14 = int_to_ptr.hbm [resolvable:$true] %s559_s14 }
  0x23   :  { %194 = vmatpush.msra.mxu0 %v170_v15  ;;  %v233_v50 = vld [vmem:[#allocation9 + $0x10] sm:$0xff]  ;;  %v232_v51 = vld [vmem:[#allocation9 + $0x8] sm:$0xff]  ;;  %v231_v52 = vld [vmem:[#allocation9] sm:$0xff]  ;;  %s557_s12 = sshll.u32 %s831_s6, 4  ;;  %s558_s12 = int_to_ptr.vmem [resolvable:$true] %s557_s12 }
  0x24   :  { %252 = vmatpush.msra.mxu1 %v237_v46  ;;  %v343_v14 = vld [vmem:[#allocation11 + $0x1a0] sm:$0xff]  ;;  %v344_v15 = vld [vmem:[#allocation11 + $0x1a8] sm:$0xff] }
  0x25   :  { %195 = vmatpush.msra.mxu0 %v169_v16  ;;  %v345_v16 = vld [vmem:[#allocation11 + $0x1b0] sm:$0xff]  ;;  %v319_v45 = vld [vmem:[#allocation11 + $0xe0] sm:$0xff]  ;;  %v320_v46 = vld [vmem:[#allocation11 + $0xe8] sm:$0xff] }
  0x26   :  { %v594_v3 = vpop.eup %593  ;;  %253 = vmatpush.msra.mxu1 %v236_v47  ;;  %v321_v47 = vld [vmem:[#allocation11 + $0xf0] sm:$0xff] }
  0x27   :  { %v144_v4 = vmul.f32 18.0, %v594_v3  ;;  %vm148_vm1 = vweird.f32 %v594_v3 }
  0x28   :  { %254 = vmatpush.msra.mxu1 %v235_v48  ;;  %v322_v48 = vld [vmem:[#allocation11 + $0xf8] sm:$0xff] }
  0x29   :  { %v145_v5 = vsub.f32 1.0, %v144_v4 }
  0x2a   :  { %255 = vmatpush.msra.mxu1 %v234_v49  ;;  %v315_v49 = vld [vmem:[#allocation11 + $0xc0] sm:$0xff] }
  0x2b   :  { %v146_v6 = vmul.f32 %v594_v3, %v145_v5  ;;  %v134_v5 = vld [vmem:[#allocation6] sm:$0xff] }
  0x2c   :  { %256 = vmatpush.msra.mxu1 %v233_v50  ;;  %136 = vst.msk [vmem:[#allocation2] sm:$0xff] %vm135_vm6, %v134_v5  ;;  %v316_v50 = vld [vmem:[#allocation11 + $0xc8] sm:$0xff]  ;;  %v295_v5 = vld [vmem:[#allocation11 + $0x20] sm:$0xff] }
  0x2d   :  { %v147_v7 = vadd.f32 %v594_v3, %v146_v6  ;;  %v351_v6 = vld [vmem:[#allocation11 + $0x1e0] sm:$0xff] }
  0x2e   :  { %257 = vmatpush.msra.mxu1 %v232_v51  ;;  %366 = vmatpush.msra.mxu2 %v351_v6  ;;  %v317_v51 = vld [vmem:[#allocation11 + $0xd0] sm:$0xff]  ;;  %v296_v6 = vld [vmem:[#allocation11 + $0x28] sm:$0xff] }
  0x2f   :  { %v149_v8 = vsel %vm148_vm1, %v594_v3, %v147_v7  ;;  %v352_v7 = vld [vmem:[#allocation11 + $0x1e8] sm:$0xff] }
  0x30   :  { %258 = vmatpush.msra.mxu1 %v231_v52  ;;  %386 = vmatpush.msra.mxu3 %v352_v7  ;;  %v318_v52 = vld [vmem:[#allocation11 + $0xd8] sm:$0xff]  ;;  %v297_v7 = vld [vmem:[#allocation11 + $0x30] sm:$0xff] }
  0x94   :  { %v142_v9 = vpop.xlane.xlu0 %141 }
  0x95   :  { %v150_v10 = vmul.f32 %v149_v8, %v142_v9  ;;  %v354_v9 = vld [vmem:[#allocation11 + $0x1f8] sm:$0xff] }
  0x96   :  { %426 = vmatpush.msrb.mxu1 %v354_v9  ;;  %v291_v9 = vld [vmem:[#allocation11] sm:$0xff] }
  0x97   :  { %v151_v11 = vsub.f32 %v137_v0, %v150_v10  ;;  %v239_v0 = vld [vmem:[#allocation14 + $0x1] ss:$0 sm:$0xff] }
  0x98   :  { %v347_v10 = vld [vmem:[#allocation11 + $0x1c0] sm:$0xff] }
  0x99   :  { %v152_v12 = vmul.f32 %v151_v11, %v151_v11  ;;  %367 = vmatpush.msra.mxu2 %v347_v10  ;;  %v292_v10 = vld [vmem:[#allocation11 + $0x8] sm:$0xff] }
  0x9b   :  { %v153_v13 = vsel %vm139_vm0, %v152_v12, 0.0  ;;  %v349_v12 = vld [vmem:[#allocation11 + $0x1d0] sm:$0xff]  ;;  %368 = vmatpush.msra.mxu2 %v343_v14 }
  0x9c   :  { %154 = vadd.xlane.f32.xlu0 %v153_v13  ;;  %v350_v13 = vld [vmem:[#allocation11 + $0x1d8] sm:$0xff] }
  0x9d   :  { %427 = vmatpush.msrb.mxu1 %v350_v13 }
 0x10f   :  { %v155_v17 = vpop.xlane.xlu0 %154 }
 0x110   :  { %v156_v18 = vmul.f32 %v155_v17, %v149_v8  ;;  %v353_v8 = vld [vmem:[#allocation11 + $0x1f0] sm:$0xff]  ;;  %v346_v17 = vld [vmem:[#allocation11 + $0x1b8] sm:$0xff] }
 0x111   :  { %406 = vmatpush.msrb.mxu0 %v353_v8  ;;  %428 = vmatpush.msrb.mxu1 %v346_v17  ;;  %v298_v8 = vld [vmem:[#allocation11 + $0x38] sm:$0xff] }
 0x112   :  { %v157_v19 = vadd.f32 1e-05, %v156_v18  ;;  %v905_v18 = vld [vmem:[#allocation2] sm:$0xff] }
 0x113   :  { %407 = vmatpush.msrb.mxu0 %v349_v12  ;;  %287 = vrot.lane.b32.xlu0 %v905_v18, %s830_s4  ;;  %v294_v12 = vld [vmem:[#allocation11 + $0x18] sm:$0xff] }
 0x114   :  { %595 = vrsqrt.f32 %v157_v19  ;;  %vm164_vm4 = vweird.f32 %v157_v19 }
 0x115   :  { %597 = vrcp.f32 %v829_v33  ;;  %408 = vmatpush.msrb.mxu0 %v345_v16  ;;  %v332_v33 = vld [vmem:[#allocation11 + $0x148] sm:$0xff] }
 0x11a   :  { %v596_v20 = vpop.eup %595 }
 0x11b   :  { %v159_v21 = vmul.f32 %v596_v20, %v157_v19  ;;  %vm165_vm3 = vweird.f32 %v596_v20  ;;  %v598_v34 = vpop.eup %597 }
 0x11c   :  { %vm166_vm5 = vmor %vm164_vm4, %vm165_vm3  ;;  %v206_v35 = vmul.f32 64.0, %v598_v34  ;;  %vm210_vm7 = vweird.f32 %v598_v34 }
 0x11d   :  { %v160_v22 = vmul.f32 %v596_v20, %v159_v21 }
 0x11e   :  { %v207_v36 = vsub.f32 1.0, %v206_v35  ;;  %v334_v35 = vld [vmem:[#allocation11 + $0x158] sm:$0xff] }
 0x11f   :  { %v161_v23 = vmul.f32 0.5, %v160_v22 }
 0x120   :  { %v208_v37 = vmul.f32 %v598_v34, %v207_v36  ;;  %v327_v36 = vld [vmem:[#allocation11 + $0x120] sm:$0xff] }
 0x121   :  { %v162_v24 = vsub.f32 1.5, %v161_v23 }
 0x122   :  { %v209_v38 = vadd.f32 %v598_v34, %v208_v37  ;;  %v328_v37 = vld [vmem:[#allocation11 + $0x128] sm:$0xff] }
 0x123   :  { %v163_v25 = vmul.f32 %v596_v20, %v162_v24  ;;  %v339_v24 = vld [vmem:[#allocation11 + $0x180] sm:$0xff] }
 0x124   :  { %v897_v39 = vsel %vm210_vm7, %v598_v34, %v209_v38  ;;  %369 = vmatpush.msra.mxu2 %v339_v24  ;;  %v333_v34 = vld [vmem:[#allocation11 + $0x150] sm:$0xff] }
 0x125   :  { %v167_v26 = vsel %vm166_vm5, %v596_v20, %v163_v25  ;;  %v340_v25 = vld [vmem:[#allocation11 + $0x188] sm:$0xff]  ;;  %v329_v38 = vld [vmem:[#allocation11 + $0x130] sm:$0xff] }
 0x126   :  { %v168_v27 = vmul.f32 %v167_v26, %v151_v11  ;;  %v348_v11 = vld [vmem:[#allocation11 + $0x1c8] sm:$0xff]  ;;  %v341_v26 = vld [vmem:[#allocation11 + $0x190] sm:$0xff] }
 0x127   :  { %387 = vmatpush.msra.mxu3 %v348_v11  ;;  %409 = vmatpush.msrb.mxu0 %v341_v26  ;;  %v293_v11 = vld [vmem:[#allocation11 + $0x10] sm:$0xff] }
 0x128   :  { %573 = vmatmul.msk.f32.vlgmr.msra.gmra.mxu0 %vm139_vm0, %v168_v27  ;;  %v342_v27 = vld [vmem:[#allocation11 + $0x198] sm:$0xff] }
 0x129   :  { %388 = vmatpush.msra.mxu3 %v344_v15  ;;  %429 = vmatpush.msrb.mxu1 %v342_v27 }
 0x12b   :  { %389 = vmatpush.msra.mxu3 %v340_v25 }
 0x185   :  { %v288_v25 = vpop.permute.xlu0 %287 }
 0x1a5   :  { %v197_v29 = vpop.f32.mrf.mxu0 }
 0x1a6   :  { %v198_v30 = vadd.f32 %v197_v29, %v172_v28  ;;  %v335_v28 = vld [vmem:[#allocation11 + $0x160] sm:$0xff]  ;;  %v336_v29 = vld [vmem:[#allocation11 + $0x168] sm:$0xff] }
 0x1a7   :  { %370 = vmatpush.msra.mxu2 %v335_v28  ;;  %390 = vmatpush.msra.mxu3 %v336_v29  ;;  %v356_v28 = vld [vmem:[#allocation14 + $0x3] ss:$8 sm:$0xf] }
 0x1a8   :  { %v200_v31 = vmax.f32 %v198_v30, 0.0  ;;  %v337_v30 = vld [vmem:[#allocation11 + $0x170] sm:$0xff]  ;;  %v358_v29 = vperm.slane %v356_v28, 0 }
 0x1a9   :  { %410 = vmatpush.msrb.mxu0 %v337_v30  ;;  %391 = vmatpush.msra.mxu3 %v332_v33  ;;  %v359_v30 = vperm.slane %v356_v28, 1 }
 0x1aa   :  { %v202_v32 = vsel %vm135_vm6, %v200_v31, 0.0 }
 0x1ab   :  { %203 = vadd.xlane.f32.xlu1 %v202_v32  ;;  %v331_v32 = vld [vmem:[#allocation11 + $0x140] sm:$0xff]  ;;  %411 = vmatpush.msrb.mxu0 %v333_v34 }
 0x1ac   :  { %371 = vmatpush.msra.mxu2 %v331_v32  ;;  %392 = vmatpush.msra.mxu3 %v328_v37 }
 0x1ad   :  { %412 = vmatpush.msrb.mxu0 %v329_v38 }
 0x1ae   :  { %372 = vmatpush.msra.mxu2 %v327_v36 }
 0x21e   :  { %v204_v40 = vpop.xlane.xlu1 %203 }
 0x21f   :  { %v212_v41 = vmul.f32 %v897_v39, %v204_v40  ;;  %v330_v40 = vld [vmem:[#allocation11 + $0x138] sm:$0xff] }
 0x221   :  { %v213_v42 = vsub.f32 %v200_v31, %v212_v41  ;;  %v338_v31 = vld [vmem:[#allocation11 + $0x178] sm:$0xff]  ;;  %v323_v41 = vld [vmem:[#allocation11 + $0x100] sm:$0xff] }
 0x222   :  { %430 = vmatpush.msrb.mxu1 %v338_v31  ;;  %373 = vmatpush.msra.mxu2 %v323_v41 }
 0x223   :  { %v214_v43 = vmul.f32 %v213_v42, %v213_v42 }
 0x224   :  { %431 = vmatpush.msrb.mxu1 %v334_v35  ;;  %374 = vmatpush.msra.mxu2 %v319_v45 }
 0x225   :  { %v215_v44 = vsel %vm135_vm6, %v214_v43, 0.0  ;;  %v325_v43 = vld [vmem:[#allocation11 + $0x110] sm:$0xff] }
 0x226   :  { %216 = vadd.xlane.f32.xlu1 %v215_v44  ;;  %432 = vmatpush.msrb.mxu1 %v330_v40  ;;  %v326_v44 = vld [vmem:[#allocation11 + $0x118] sm:$0xff] }
 0x227   :  { %413 = vmatpush.msrb.mxu0 %v325_v43  ;;  %375 = vmatpush.msra.mxu2 %v315_v49 }
 0x228   :  { %433 = vmatpush.msrb.mxu1 %v326_v44 }
 0x229   :  { %414 = vmatpush.msrb.mxu0 %v321_v47 }
 0x22a   :  { %434 = vmatpush.msrb.mxu1 %v322_v48  ;;  %v361_v48 = vperm.slane %v356_v28, 3 }
 0x22b   :  { %415 = vmatpush.msrb.mxu0 %v317_v51 }
 0x22c   :  { %435 = vmatpush.msrb.mxu1 %v318_v52 }
 0x299   :  { %v217_v53 = vpop.xlane.xlu1 %216 }
 0x29a   :  { %v218_v54 = vmul.f32 %v217_v53, %v897_v39  ;;  %v311_v53 = vld [vmem:[#allocation11 + $0xa0] sm:$0xff] }
 0x29b   :  { %376 = vmatpush.msra.mxu2 %v311_v53  ;;  %v360_v53 = vperm.slane %v356_v28, 2 }
 0x29c   :  { %v219_v55 = vadd.f32 1e-05, %v218_v54  ;;  %v312_v54 = vld [vmem:[#allocation11 + $0xa8] sm:$0xff] }
 0x29e   :  { %599 = vrsqrt.f32 %v219_v55  ;;  %vm226_vm9 = vweird.f32 %v219_v55 }
 0x2a4   :  { %v600_v56 = vpop.eup %599 }
 0x2a5   :  { %v221_v57 = vmul.f32 %v600_v56, %v219_v55  ;;  %vm227_vm8 = vweird.f32 %v600_v56  ;;  %v313_v55 = vld [vmem:[#allocation11 + $0xb0] sm:$0xff] }
 0x2a6   :  { %vm228_vm10 = vmor %vm226_vm9, %vm227_vm8  ;;  %416 = vmatpush.msrb.mxu0 %v313_v55 }
 0x2a7   :  { %v222_v58 = vmul.f32 %v600_v56, %v221_v57  ;;  %v307_v57 = vld [vmem:[#allocation11 + $0x80] sm:$0xff] }
 0x2a8   :  { %377 = vmatpush.msra.mxu2 %v307_v57 }
 0x2a9   :  { %v223_v59 = vmul.f32 0.5, %v222_v58  ;;  %v308_v58 = vld [vmem:[#allocation11 + $0x88] sm:$0xff] }
 0x2ab   :  { %v224_v60 = vsub.f32 1.5, %v223_v59  ;;  %v309_v59 = vld [vmem:[#allocation11 + $0x90] sm:$0xff] }
 0x2ac   :  { %417 = vmatpush.msrb.mxu0 %v309_v59 }
 0x2ad   :  { %v225_v61 = vmul.f32 %v600_v56, %v224_v60  ;;  %v310_v60 = vld [vmem:[#allocation11 + $0x98] sm:$0xff] }
 0x2af   :  { %v229_v62 = vsel %vm228_vm10, %v600_v56, %v225_v61  ;;  %v314_v56 = vld [vmem:[#allocation11 + $0xb8] sm:$0xff]  ;;  %v303_v61 = vld [vmem:[#allocation11 + $0x60] sm:$0xff] }
 0x2b0   :  { %v230_v63 = vmul.f32 %v229_v62, %v213_v42  ;;  %v324_v42 = vld [vmem:[#allocation11 + $0x108] sm:$0xff]  ;;  %436 = vmatpush.msrb.mxu1 %v314_v56  ;;  %378 = vmatpush.msra.mxu2 %v303_v61 }
 0x2b1   :  { %393 = vmatpush.msra.mxu3 %v324_v42  ;;  %v304_v62 = vld [vmem:[#allocation11 + $0x68] sm:$0xff] }
 0x2b2   :  { %574 = vmatmul.msk.f32.vlgmr.msra.gmra.mxu1 %vm135_vm6, %v230_v63  ;;  %v305_v63 = vld [vmem:[#allocation11 + $0x70] sm:$0xff] }
 0x2b3   :  { %394 = vmatpush.msra.mxu3 %v320_v46  ;;  %437 = vmatpush.msrb.mxu1 %v310_v60 }
 0x2b4   :  { %418 = vmatpush.msrb.mxu0 %v305_v63 }
 0x2b5   :  { %395 = vmatpush.msra.mxu3 %v316_v50 }
 0x2b7   :  { %396 = vmatpush.msra.mxu3 %v312_v54 }
 0x2b9   :  { %397 = vmatpush.msra.mxu3 %v308_v58 }
 0x2bb   :  { %398 = vmatpush.msra.mxu3 %v304_v62 }
 0x32f   :  { %v260_v1 = vpop.f32.mrf.mxu1 }
 0x330   :  { %v261_v2 = vadd.f32 %v260_v1, %v239_v0  ;;  %v306_v0 = vld [vmem:[#allocation11 + $0x78] sm:$0xff]  ;;  %v299_v1 = vld [vmem:[#allocation11 + $0x40] sm:$0xff] }
 0x331   :  { %438 = vmatpush.msrb.mxu1 %v306_v0  ;;  %379 = vmatpush.msra.mxu2 %v299_v1 }
 0x332   :  { %v263_v3 = vmax.f32 %v261_v2, 0.0  ;;  %v300_v2 = vld [vmem:[#allocation11 + $0x48] sm:$0xff] }
 0x333   :  { %399 = vmatpush.msra.mxu3 %v300_v2  ;;  %380 = vmatpush.msra.mxu2 %v295_v5 }
 0x334   :  { %v264_v4 = vsel %vm135_vm6, %v263_v3, 0.0 }
 0x335   :  { %265 = vadd.xlane.f32.xlu2 %v264_v4  ;;  %v302_v4 = vld [vmem:[#allocation11 + $0x58] sm:$0xff]  ;;  %400 = vmatpush.msra.mxu3 %v296_v6 }
 0x336   :  { %439 = vmatpush.msrb.mxu1 %v302_v4  ;;  %381 = vmatpush.msra.mxu2 %v291_v9 }
 0x337   :  { %401 = vmatpush.msra.mxu3 %v292_v10 }
 0x338   :  { %440 = vmatpush.msrb.mxu1 %v298_v8 }
 0x33a   :  { %441 = vmatpush.msrb.mxu1 %v294_v12 }
 0x3a8   :  { %v266_v19 = vpop.xlane.xlu2 %265 }
 0x3a9   :  { %v267_v20 = vmul.f32 %v266_v19, %v897_v39 }
 0x3ab   :  { %v910_v21 = vsub.f32 %v263_v3, %v267_v20  ;;  %v301_v3 = vld [vmem:[#allocation11 + $0x50] sm:$0xff] }
 0x3ac   :  { %419 = vmatpush.msrb.mxu0 %v301_v3 }
 0x3ad   :  { %v269_v22 = vmul.f32 %v910_v21, %v910_v21 }
 0x3ae   :  { %420 = vmatpush.msrb.mxu0 %v297_v7 }
 0x3af   :  { %v270_v23 = vsel %vm135_vm6, %v269_v22, 0.0 }
 0x3b0   :  { %271 = vadd.xlane.f32.xlu2 %v270_v23  ;;  %421 = vmatpush.msrb.mxu0 %v293_v11 }
 0x423   :  { %v272_v13 = vpop.xlane.xlu2 %271 }
 0x424   :  { %v273_v14 = vmul.f32 %v272_v13, %v897_v39 }
 0x426   :  { %v274_v15 = vadd.f32 1e-05, %v273_v14 }
 0x428   :  { %601 = vrsqrt.f32 %v274_v15  ;;  %vm281_vm12 = vweird.f32 %v274_v15 }
 0x42e   :  { %v602_v16 = vpop.eup %601 }
 0x42f   :  { %v276_v17 = vmul.f32 %v602_v16, %v274_v15  ;;  %vm282_vm11 = vweird.f32 %v602_v16 }
 0x430   :  { %vm283_vm13 = vmor %vm281_vm12, %vm282_vm11 }
 0x431   :  { %v277_v19 = vmul.f32 %v602_v16, %v276_v17  ;;  %v520_v17 = vld [vmem:[#allocation12 + $0x30] sm:$0xff] }
 0x433   :  { %v278_v20 = vmul.f32 0.5, %v277_v19  ;;  %v519_v19 = vld [vmem:[#allocation12 + $0x28] sm:$0xff] }
 0x435   :  { %v279_v22 = vsub.f32 1.5, %v278_v20  ;;  %v517_v20 = vld [vmem:[#allocation12 + $0x18] sm:$0xff] }
 0x437   :  { %v280_v23 = vmul.f32 %v602_v16, %v279_v22  ;;  %v516_v22 = vld [vmem:[#allocation12 + $0x10] sm:$0xff] }
 0x439   :  { %v284_v24 = vsel %vm283_vm13, %v602_v16, %v280_v23  ;;  %v521_v16 = vld [vmem:[#allocation12 + $0x38] sm:$0xff]  ;;  %v515_v23 = vld [vmem:[#allocation12 + $0x8] sm:$0xff] }
 0x43a   :  { %v285_v26 = vmul.f32 %v284_v24, %v910_v21  ;;  %534 = vmatpush.msrb.mxu2 %v521_v16  ;;  %v514_v24 = vld [vmem:[#allocation12] sm:$0xff] }
 0x43c   :  { %v290_v27 = vsel %vm135_vm6, %v285_v26, %v288_v25  ;;  %535 = vmatpush.msrb.mxu2 %v520_v17 }
 0x43d   :  { %382 = vmatmul.f32.vlgmr.msra.gmra.mxu2 %v290_v27  ;;  %402 = vmatmul.f32.vlgmr.msra.gmra.mxu3 %v290_v27 }
 0x43e   :  { %422 = vmatmul.f32.vlgmr.msrb.gmra.mxu0 %v290_v27  ;;  %442 = vmatmul.f32.vlgmr.msrb.gmra.mxu1 %v290_v27 }
 0x43f   :  { %536 = vmatpush.msrb.mxu2 %v519_v19 }
 0x4bb   :  { %v443_v51 = vpop.f32.mrf.mxu1  ;;  %v423_v55 = vpop.f32.mrf.mxu0 }
 0x4bc   :  { %v444_v57 = vadd.f32 %v443_v51, %v361_v48  ;;  %v424_v61 = vadd.f32 %v423_v55, %v360_v53 }
 0x4c0   :  { %v383_v31 = vpop.f32.mrf.mxu2  ;;  %v403_v32 = vpop.f32.mrf.mxu3 }
 0x4c1   :  { %v384_v33 = vadd.f32 %v383_v31, %v358_v29  ;;  %v404_v34 = vadd.f32 %v403_v32, %v359_v30 }
 0x4c3   :  { %v575_v35 = vmul.f32 -1.442695, %v384_v33  ;;  %v576_v36 = vmul.f32 -1.442695, %v404_v34 }
 0x4c5   :  { %603 = vpow2.f32 %v575_v35 }
 0x4c6   :  { %605 = vpow2.f32 %v576_v36  ;;  %v522_v36 = vld [vmem:[#allocation14 + $0x2] ss:$0 sm:$0xff] }
 0x4cb   :  { %v604_v37 = vpop.eup %603 }
 0x4cc   :  { %v606_v38 = vpop.eup %605  ;;  %v449_v21 = vadd.f32 1.0, %v604_v37 }
 0x4cd   :  { %v468_v40 = vadd.f32 1.0, %v606_v38 }
 0x4ce   :  { %607 = vrcp.f32 %v449_v21  ;;  %v461_v46 = vand.u32 2147483648, %v449_v21  ;;  %v459_v50 = vand.u32 2147483647, %v449_v21  ;;  %vm455_vm15 = vweird.f32 %v449_v21 }
 0x4cf   :  { %609 = vrcp.f32 %v468_v40  ;;  %v480_v63 = vand.u32 2147483648, %v468_v40  ;;  %vm474_vm3 = vweird.f32 %v468_v40  ;;  %v478_v0 = vand.u32 2147483647, %v468_v40 }
 0x4d0   :  { %v462_v56 = vor.u32 1.1754944e-38, %v461_v46  ;;  %vm460_vm1 = vcmp.eq.f32.partialorder %v459_v50, 8.507059e+37 }
 0x4d1   :  { %v481_v3 = vor.u32 1.1754944e-38, %v480_v63  ;;  %vm479_vm5 = vcmp.eq.f32.partialorder %v478_v0, 8.507059e+37 }
 0x4d4   :  { %v608_v41 = vpop.eup %607 }
 0x4d5   :  { %v610_v42 = vpop.eup %609  ;;  %v451_v43 = vmul.f32 %v608_v41, %v449_v21  ;;  %vm456_vm14 = vweird.f32 %v608_v41 }
 0x4d6   :  { %v470_v44 = vmul.f32 %v610_v42, %v468_v40  ;;  %vm457_vm0 = vmor %vm455_vm15, %vm456_vm14  ;;  %vm475_vm2 = vweird.f32 %v610_v42 }
 0x4d7   :  { %v452_v45 = vsub.f32 1.0, %v451_v43  ;;  %vm476_vm4 = vmor %vm474_vm3, %vm475_vm2 }
 0x4d8   :  { %v471_v47 = vsub.f32 1.0, %v470_v44 }
 0x4d9   :  { %v453_v49 = vmul.f32 %v608_v41, %v452_v45 }
 0x4da   :  { %v472_v52 = vmul.f32 %v610_v42, %v471_v47 }
 0x4db   :  { %v454_v54 = vadd.f32 %v608_v41, %v453_v49 }
 0x4dc   :  { %v473_v60 = vadd.f32 %v610_v42, %v472_v52 }
 0x4dd   :  { %v458_v58 = vsel %vm457_vm0, %v608_v41, %v454_v54 }
 0x4de   :  { %v463_v59 = vsel %vm460_vm1, %v462_v56, %v458_v58  ;;  %v477_v2 = vsel %vm476_vm4, %v610_v42, %v473_v60 }
 0x4df   :  { %v484_v62 = vmul.f32 %v463_v59, %v444_v57  ;;  %v482_v4 = vsel %vm479_vm5, %v481_v3, %v477_v2 }
 0x4e0   :  { %v487_v5 = vsub.f32 1.0, %v482_v4  ;;  %v489_v8 = vmul.f32 %v482_v4, %v905_v18  ;;  %v518_v18 = vld [vmem:[#allocation12 + $0x20] sm:$0xff] }
 0x4e1   :  { %v485_v1 = vadd.f32 %v484_v62, %v424_v61  ;;  %537 = vmatpush.msrb.mxu2 %v518_v18 }
 0x4e3   :  { %611 = vtanh.f32 %v485_v1  ;;  %538 = vmatpush.msrb.mxu2 %v517_v20 }
 0x4e5   :  { %539 = vmatpush.msrb.mxu2 %v516_v22 }
 0x4e7   :  { %540 = vmatpush.msrb.mxu2 %v515_v23 }
 0x4e9   :  { %v612_v6 = vpop.eup %611  ;;  %541 = vmatpush.msrb.mxu2 %v514_v24 }
 0x4ea   :  { %v488_v7 = vmul.f32 %v612_v6, %v487_v5 }
 0x4ec   :  { %v490_v9 = vadd.f32 %v489_v8, %v488_v7 }
 0x4ee   :  { %v492_v10 = vsel %vm135_vm6, %v490_v9, 0.0  ;;  %491 = vst.msk [vmem:[#allocation2] sm:$0xff] %vm135_vm6, %v490_v9 }
 0x4ef   :  { %493 = vadd.xlane.f32.xlu1 %v492_v10 }
 0x562   :  { %v494_v11 = vpop.xlane.xlu1 %493 }
 0x563   :  { %v495_v12 = vmul.f32 %v494_v11, %v897_v39 }
 0x565   :  { %v496_v13 = vsub.f32 %v490_v9, %v495_v12 }
 0x567   :  { %v497_v14 = vmul.f32 %v496_v13, %v496_v13 }
 0x569   :  { %v498_v15 = vsel %vm135_vm6, %v497_v14, 0.0 }
 0x56a   :  { %499 = vadd.xlane.f32.xlu2 %v498_v15 }
 0x5dd   :  { %v500_v25 = vpop.xlane.xlu2 %499 }
 0x5de   :  { %v501_v26 = vmul.f32 %v500_v25, %v897_v39 }
 0x5e0   :  { %v502_v27 = vadd.f32 1e-05, %v501_v26 }
 0x5e2   :  { %613 = vrsqrt.f32 %v502_v27  ;;  %vm509_vm8 = vweird.f32 %v502_v27 }
 0x5e8   :  { %v614_v28 = vpop.eup %613 }
 0x5e9   :  { %v504_v29 = vmul.f32 %v614_v28, %v502_v27  ;;  %vm510_vm7 = vweird.f32 %v614_v28 }
 0x5ea   :  { %vm511_vm9 = vmor %vm509_vm8, %vm510_vm7 }
 0x5eb   :  { %v505_v30 = vmul.f32 %v614_v28, %v504_v29 }
 0x5ed   :  { %v506_v31 = vmul.f32 0.5, %v505_v30 }
 0x5ef   :  { %v507_v32 = vsub.f32 1.5, %v506_v31 }
 0x5f1   :  { %v508_v33 = vmul.f32 %v614_v28, %v507_v32 }
 0x5f3   :  { %v512_v34 = vsel %vm511_vm9, %v614_v28, %v508_v33 }
 0x5f4   :  { %v513_v35 = vmul.f32 %v512_v34, %v496_v13 }
 0x5f6   :  { %577 = vmatmul.msk.f32.vlgmr.msrb.gmra.mxu2 %vm135_vm6, %v513_v35 }
 0x679   :  { %v543_v37 = vpop.f32.mrf.mxu2 }
 0x67a   :  { %v544_v38 = vadd.f32 %v543_v37, %v522_v36 }
 0x67c   :  { %547 = vrot.lane.b32.xlu1 %v544_v38, %s830_s4 }
 0x6ee   :  { %v548_v39 = vpop.permute.xlu1 %547 }
 0x6ef   :  { %v550_v21 = vsel %vm135_vm6, %v490_v9, %v548_v39 }
 0x6f0   :  { %551 = vst [vmem:[#allocation15] sm:$0xff] %v550_v21 }
 0x6f1   :  { %562 = dma.vmem_to_hbm [thread:$0]  %s558_s12, 128, %s560_s14, [#allocation5]  }
 0x6f2   :  { %815 = dma.done.wait [#allocation5], 128  }
 0x6f3   :  { %816 = vsyncadd [#allocation5], 4294967168 }
 0x6f4   :  { %567 = vsyncpa [#allocation4], 1 }
 0x6f5   :  { %568 = vsyncpa [#allocation7], 1 }
 0x6f6   :  { %569 = vsyncpa [#allocation10], 1 }
 0x6f7   :  { %570 = vsyncpa [#allocation13], 1 }
 0x6f8   :  { %571 = vsyncpa [#allocation5], 1 }

</bundles_post_ra>
